<compile_context>
chip_gen: v7x
topology: tpu7x:2x2x1
jax: 0.10.0
libtpu: 0.0.40
codegen_flags: <defaults>
</compile_context>

<pallas_src>
import jax
import jax.numpy as jnp
from jax import lax
from jax.experimental import pallas as pl
from jax.experimental.pallas import tpu as pltpu


# ----------------------------------------------------------------------------
# Pallas kernel body. Grid point = (layer l, edge block e).
# ----------------------------------------------------------------------------
def _rf_kernel(x_ref, inv_ref, rowl_ref, coll_ref, rows_ref, ea_ref,
               wpack_ref, velterm_ref,
               out_ref,
               x_sc, agg_sc, diff_cache, rowoh_cache):
    f32 = jnp.float32
    l = pl.program_id(0)
    e = pl.program_id(1)
    n_l = pl.num_programs(0)
    n_e = pl.num_programs(1)

    N_pad = x_ref.shape[1]
    E_blk = rowl_ref.shape[1]
    A = ea_ref.shape[0]

    # ---- one-time init (first grid step) ------------------------------------
    @pl.when((l == 0) & (e == 0))
    def _init():
        x_sc[...] = x_ref[...]

    # ---- per-layer init (first edge block of each layer) ---------------------
    @pl.when(e == 0)
    def _layer_init():
        agg_sc[...] = jnp.zeros_like(agg_sc)

    # ---- build layer-invariant incidence cache (layer 0 only) ----------------
    @pl.when(l == 0)
    def _build_cache():
        row_l = rowl_ref[...]            # (1, E_blk) i32, -1 sentinel for padded edges
        col_l = coll_ref[...]            # (1, E_blk) i32
        row_s = rows_ref[...]            # (E_blk, 1) i32
        # Fused gather incidence: diff_ohT[n, j] = (row[j]==n) - (col[j]==n).
        niota_ne = lax.broadcasted_iota(jnp.int32, (N_pad, E_blk), 0)
        diff_cache[e] = ((niota_ne == row_l).astype(f32)
                         - (niota_ne == col_l).astype(f32))      # (N_pad, E_blk)
        # Scatter one-hot, built directly in (E_blk, N_pad) orientation (no transpose).
        niota_en = lax.broadcasted_iota(jnp.int32, (E_blk, N_pad), 1)
        rowoh_cache[e] = (niota_en == row_s).astype(f32)         # (E_blk, N_pad)

    diff_ohT = diff_cache[e]                                     # (N_pad, E_blk)
    row_oh = rowoh_cache[e]                                      # (E_blk, N_pad)

    # ---- per-edge-block messages ---------------------------------------------
    x = x_sc[...]                                                # (3, N_pad)
    x_diff = jnp.dot(x, diff_ohT, preferred_element_type=f32)    # (3, E_blk)   MXU
    radial = jnp.sqrt(jnp.sum(x_diff * x_diff, axis=0, keepdims=True))  # (1, E_blk)

    wp = wpack_ref[0]                 # (H, 3 + A): [w1r | b1 | w2 | w1e...]
    w1r = wp[:, 0:1]
    b1 = wp[:, 1:2]
    w2 = wp[:, 2:3]
    ea = ea_ref[...]                  # (A, E_blk)

    # phi MLP: all skinny contractions on the VPU (no K=1 / width-1 MXU passes).
    h1 = w1r * radial + b1                                       # (H, E_blk)
    for a in range(A):                                           # A is tiny and static
        h1 = h1 + wp[:, 3 + a:4 + a] * ea[a:a + 1, :]
    h1 = jax.nn.silu(h1)
    e_out = jnp.tanh(jnp.sum(h1 * w2, axis=0, keepdims=True))    # (1, E_blk)

    m_ij = x_diff * e_out                                        # (3, E_blk)
    agg_sc[...] += jnp.dot(m_ij, row_oh, preferred_element_type=f32)   # (3, N_pad)  MXU

    # ---- layer finalize (last edge block of the layer) ------------------------
    @pl.when(e == n_e - 1)
    def _finalize_layer():
        # agg mean = agg_sum * precomputed 1/max(count,1); velocity term precomputed in XLA.
        x_sc[...] = x_sc[...] + agg_sc[...] * inv_ref[...] + velterm_ref[0]

    @pl.when((e == n_e - 1) & (l == n_l - 1))
    def _write_out():
        out_ref[...] = x_sc[...]


# ----------------------------------------------------------------------------
# Wrapper: layout plumbing (transpose + pad), cheap node-side precomputes, and
# the gridded pallas_call.
# ----------------------------------------------------------------------------
def radial_field_forward(x, v, edge_index, edge_attr, params, *, n_layers, e_blk=None):
    """x, v: (N, 3) f32; edge_index: (2, E) int; edge_attr: (E, A>=1) f32."""
    f32 = jnp.float32
    N = x.shape[0]
    E = edge_index.shape[1]
    A = edge_attr.shape[1]
    H = params["w1r"].shape[1]
    L = n_layers

    N_pad = pl.cdiv(N, 128) * 128          # lane-dense node axis
    if e_blk is None:
        # Single block for small graphs (edge inputs DMA'd once); >=256 fills the
        # 256-wide MXU lane dim on v6e/v7x; capped so (N_pad, e_blk) temporaries stay small.
        e_blk = min(512, pl.cdiv(E, 128) * 128)
    E_pad = pl.cdiv(E, e_blk) * e_blk
    n_eblk = E_pad // e_blk

    # Transposed, lane-dense inputs; padded edges use sentinel index -1 (matches nothing).
    x_t = jnp.zeros((3, N_pad), f32).at[:, :N].set(x.T.astype(f32))
    row = edge_index[0].astype(jnp.int32)
    col = edge_index[1].astype(jnp.int32)
    row_l = jnp.full((1, E_pad), -1, jnp.int32).at[0, :E].set(row)
    col_l = jnp.full((1, E_pad), -1, jnp.int32).at[0, :E].set(col)
    row_s = jnp.full((E_pad, 1), -1, jnp.int32).at[:E, 0].set(row)
    ea_t = jnp.zeros((A, E_pad), f32).at[:, :E].set(edge_attr.T.astype(f32))

    # Hoisted node-side precomputes (negligible XLA work, keeps the kernel on the edge path):
    #   1 / max(in_degree, 1)  and  v * coord_mlp_vel(vel_norm) per layer.
    count = jnp.zeros((N,), f32).at[row].add(1.0)
    inv_t = jnp.zeros((1, N_pad), f32).at[0, :N].set(1.0 / jnp.maximum(count, 1.0))

    vf = v.astype(f32)
    vel_norm = jnp.sqrt(jnp.sum(vf * vf, axis=1, keepdims=True))                   # (N, 1)
    hv = jax.nn.silu(vel_norm[None] @ jnp.transpose(params["wv1"], (0, 2, 1))
                     + jnp.transpose(params["bv1"], (0, 2, 1)))                    # (L, N, H)
    vfac = hv @ params["wv2"] + jnp.transpose(params["bv2"], (0, 2, 1))            # (L, N, 1)
    velterm = jnp.transpose(vf[None] * vfac, (0, 2, 1))                            # (L, 3, N)
    velterm_t = jnp.zeros((L, 3, N_pad), f32).at[:, :, :N].set(velterm)

    # Pack the 4 per-layer phi weights into ONE layer-indexed input: [w1r | b1 | w2 | w1e].
    wpack = jnp.concatenate(
        [params["w1r"], params["b1"], params["w2"], params["w1e"]], axis=2).astype(f32)

    const_map = lambda l, e: (0, 0)
    edge_lane_map = lambda l, e: (0, e)
    edge_sub_map = lambda l, e: (e, 0)
    layer_map = lambda l, e: (l, 0, 0)

    in_specs = [
        pl.BlockSpec((3, N_pad), const_map),       # x (transposed, padded)
        pl.BlockSpec((1, N_pad), const_map),       # 1 / max(in_degree, 1)
        pl.BlockSpec((1, e_blk), edge_lane_map),   # row, lane orientation (gather)
        pl.BlockSpec((1, e_blk), edge_lane_map),   # col, lane orientation (gather)
        pl.BlockSpec((e_blk, 1), edge_sub_map),    # row, sublane orientation (scatter)
        pl.BlockSpec((A, e_blk), edge_lane_map),   # edge_attr (transposed)
        pl.BlockSpec((1, H, 3 + A), layer_map),    # packed phi weights
        pl.BlockSpec((1, 3, N_pad), layer_map),    # v * coord_mlp_vel(vel_norm), per layer
    ]

    # Explicit VMEM budget: incidence cache + coordinate scratch + headroom, v7x-safe cap.
    cache_bytes = 2 * N_pad * E_pad * 4
    scratch_bytes = 2 * 3 * N_pad * 4
    vmem_limit = int(min(64 * 1024 * 1024,
                         max(32 * 1024 * 1024, cache_bytes + scratch_bytes + (8 << 20))))

    out_t = pl.pallas_call(
        _rf_kernel,
        out_shape=jax.ShapeDtypeStruct((3, N_pad), f32),
        grid=(L, n_eblk),
        in_specs=in_specs,
        out_specs=pl.BlockSpec((3, N_pad), const_map),
        scratch_shapes=[
            pltpu.VMEM((3, N_pad), f32),               # x_sc : running coordinates
            pltpu.VMEM((3, N_pad), f32),               # agg_sc : per-layer scatter-sum
            pltpu.VMEM((n_eblk, N_pad, e_blk), f32),   # cached onehot(row) - onehot(col)
            pltpu.VMEM((n_eblk, e_blk, N_pad), f32),   # cached onehot(row) (scatter side)
        ],
        compiler_params=pltpu.CompilerParams(
            dimension_semantics=("arbitrary", "arbitrary"),
            vmem_limit_bytes=vmem_limit),
    )(x_t, inv_t, row_l, col_l, row_s, ea_t, wpack, velterm_t)

    return out_t[:, :N].T


# ----------------------------------------------------------------------------
# Pure-JAX reference (mirrors the PyTorch module) for correctness checking.
# ----------------------------------------------------------------------------
def radial_field_reference(x, v, edge_index, edge_attr, params, *, n_layers):
    row = edge_index[0]
    col = edge_index[1]
    N = x.shape[0]
    vel_norm = jnp.sqrt(jnp.sum(v * v, axis=1, keepdims=True))
    for l in range(n_layers):
        x_diff = x[row] - x[col]
        radial = jnp.sqrt(jnp.sum(x_diff * x_diff, axis=1, keepdims=True))
        h1 = jax.nn.silu(radial @ params["w1r"][l].T
                         + edge_attr @ params["w1e"][l].T
                         + params["b1"][l].T)
        e_out = jnp.tanh(h1 @ params["w2"][l])
        m_ij = x_diff * e_out
        agg_sum = jnp.zeros((N, 3), jnp.float32).at[row].add(m_ij)
        count = jnp.zeros((N, 1), jnp.float32).at[row].add(1.0)
        agg = agg_sum / jnp.maximum(count, 1.0)
        hv = jax.nn.silu(vel_norm @ params["wv1"][l].T + params["bv1"][l].T)
        vfac = hv @ params["wv2"][l] + params["bv2"][l].T
        x = x + agg + v * vfac
    return x


# ----------------------------------------------------------------------------
# Deterministic parameter init (shapes follow RadialFieldLayer's __init__,
# PyTorch-native (out_features, in_features) layout, stacked over layers).
# ----------------------------------------------------------------------------
def init_params(key, hidden_dim, in_edge_dim, n_layers):
    H, A, L = hidden_dim, in_edge_dim, n_layers
    ks = jax.random.split(key, 8)
    bnd1 = 1.0 / jnp.sqrt(1.0 + A)                   # Linear(1+A -> H) default init
    bnd2 = 0.001 * jnp.sqrt(6.0 / (H + 1.0))         # xavier_uniform(gain=0.001) Linear(H -> 1)
    bndv1 = 1.0                                      # Linear(1 -> H)
    bndv2 = 1.0 / jnp.sqrt(H)                        # Linear(H -> 1)
    u = lambda k, s, b: jax.random.uniform(k, s, jnp.float32, -b, b)
    return {
        "w1r": u(ks[0], (L, H, 1), bnd1),   # phi Linear(1+A, H): radial column
        "w1e": u(ks[1], (L, H, A), bnd1),   # phi Linear(1+A, H): edge_attr columns
        "b1":  u(ks[2], (L, H, 1), bnd1),
        "w2":  u(ks[3], (L, H, 1), bnd2),   # phi Linear(H, 1, bias=False)
        "wv1": u(ks[4], (L, H, 1), bndv1),  # coord_mlp_vel Linear(1, H)
        "bv1": u(ks[5], (L, H, 1), bndv1),
        "wv2": u(ks[6], (L, H, 1), bndv2),  # coord_mlp_vel Linear(H, 1)
        "bv2": u(ks[7], (L, 1, 1), bndv2),
    }


if __name__ == "__main__":
    N, E, H, A, L = 8, 16, 32, 2, 4   # nodes, edges, hidden_dim, in_edge_dim, n_layers

    key = jax.random.PRNGKey(0)
    k_x, k_v, k_e, k_a, k_h, k_p = jax.random.split(key, 6)

    x = jax.random.normal(k_x, (N, 3), jnp.float32)            # data.x (coordinates)
    v = jax.random.normal(k_v, (N, 3), jnp.float32)            # data.v (velocities)
    h = jax.random.normal(k_h, (N, H), jnp.float32)            # data.h (passed through)
    edge_index = jax.random.randint(k_e, (2, E), 0, N, jnp.int32)
    edge_attr = jax.random.normal(k_a, (E, A), jnp.float32)

    params = init_params(k_p, H, A, L)

    x_pred = radial_field_forward(x, v, edge_index, edge_attr, params, n_layers=L)
    x_pred = jax.block_until_ready(x_pred)
    h_pred = h  # module: data.h_pred = data.h (Radial Field does not update node features)

    x_ref = radial_field_reference(x, v, edge_index, edge_attr, params, n_layers=L)
    assert x_pred.shape == (N, 3) and x_pred.dtype == jnp.float32
    assert jnp.allclose(x_pred, x_ref, rtol=1e-4, atol=1e-4), "mismatch vs reference"

    print("KERNEL_OK")
</pallas_src>

<mosaic_0001>
module attributes {stable_mosaic.version = 11 : i64} {
  func.func @_rf_kernel(%arg0: i32, %arg1: i32, %arg2: memref<3x128xf32, #tpu.memory_space<vmem>>, %arg3: memref<1x128xf32, #tpu.memory_space<vmem>>, %arg4: memref<1x128xi32, #tpu.memory_space<vmem>>, %arg5: memref<1x128xi32, #tpu.memory_space<vmem>>, %arg6: memref<128x1xi32, #tpu.memory_space<vmem>>, %arg7: memref<2x128xf32, #tpu.memory_space<vmem>>, %arg8: memref<1x32x5xf32, #tpu.memory_space<vmem>>, %arg9: memref<1x3x128xf32, #tpu.memory_space<vmem>>, %arg10: memref<3x128xf32, #tpu.memory_space<vmem>>, %arg11: memref<3x128xf32, #tpu.memory_space<vmem>>, %arg12: memref<3x128xf32, #tpu.memory_space<vmem>>, %arg13: memref<1x128x128xf32, #tpu.memory_space<vmem>>, %arg14: memref<1x128x128xf32, #tpu.memory_space<vmem>>) attributes {dimension_semantics = [#tpu.dimension_semantics<arbitrary>, #tpu.dimension_semantics<arbitrary>], iteration_bounds = array<i64: 4, 1>, scalar_prefetch = 0 : i64, scratch_operands = 4 : i64, tpu.core_type = #tpu.core_type<tc>, window_params = [{pipeline_mode = #tpu.pipeline_mode<synchronous>, transform_indices = @transform_0, window_bounds = array<i64: 3, 128>}, {pipeline_mode = #tpu.pipeline_mode<synchronous>, transform_indices = @transform_1, window_bounds = array<i64: 1, 128>}, {transform_indices = @transform_2, window_bounds = array<i64: 1, 128>}, {transform_indices = @transform_3, window_bounds = array<i64: 1, 128>}, {transform_indices = @transform_4, window_bounds = array<i64: 128, 1>}, {transform_indices = @transform_5, window_bounds = array<i64: 2, 128>}, {transform_indices = @transform_6, window_bounds = array<i64: 1, 32, 5>}, {transform_indices = @transform_7, window_bounds = array<i64: 1, 3, 128>}, {pipeline_mode = #tpu.pipeline_mode<synchronous>, transform_indices = @transform_8, window_bounds = array<i64: 3, 128>}]} {
    %c0_i32 = arith.constant 0 : i32
    %0 = arith.cmpi eq, %arg0, %c0_i32 : i32
    %c0_i32_0 = arith.constant 0 : i32
    %1 = arith.cmpi eq, %arg1, %c0_i32_0 : i32
    %2 = arith.andi %0, %1 : i1
    %3 = arith.extui %2 : i1 to i32
    %c0_i32_1 = arith.constant 0 : i32
    %4 = arith.cmpi ne, %3, %c0_i32_1 : i32
    scf.if %4 {
      %c0_28 = arith.constant 0 : index
      %c0_29 = arith.constant 0 : index
      %71 = vector.load %arg2[%c0_28, %c0_29] : memref<3x128xf32, #tpu.memory_space<vmem>>, vector<3x128xf32>
      %c0_30 = arith.constant 0 : index
      %c0_31 = arith.constant 0 : index
      %72 = vector.load %arg11[%c0_30, %c0_31] : memref<3x128xf32, #tpu.memory_space<vmem>>, vector<3x128xf32>
      tpu.vector_store %arg11[%c0_30, %c0_31], %71 {strides = array<i32>} : memref<3x128xf32, #tpu.memory_space<vmem>>, vector<3x128xf32>,
    } else {
    }
    %c0_i32_2 = arith.constant 0 : i32
    %5 = arith.cmpi eq, %arg1, %c0_i32_2 : i32
    %6 = arith.extui %5 : i1 to i32
    %c0_i32_3 = arith.constant 0 : i32
    %7 = arith.cmpi ne, %6, %c0_i32_3 : i32
    scf.if %7 {
      %cst_28 = arith.constant 0.000000e+00 : f32
      %71 = vector.broadcast %cst_28 : f32 to vector<3x128xf32>
      %c0_29 = arith.constant 0 : index
      %c0_30 = arith.constant 0 : index
      %72 = vector.load %arg12[%c0_29, %c0_30] : memref<3x128xf32, #tpu.memory_space<vmem>>, vector<3x128xf32>
      tpu.vector_store %arg12[%c0_29, %c0_30], %71 {strides = array<i32>} : memref<3x128xf32, #tpu.memory_space<vmem>>, vector<3x128xf32>,
    } else {
    }
    %c0_i32_4 = arith.constant 0 : i32
    %8 = arith.cmpi eq, %arg0, %c0_i32_4 : i32
    %9 = arith.extui %8 : i1 to i32
    %c0_i32_5 = arith.constant 0 : i32
    %10 = arith.cmpi ne, %9, %c0_i32_5 : i32
    scf.if %10 {
      %c0_28 = arith.constant 0 : index
      %c0_29 = arith.constant 0 : index
      %71 = vector.load %arg4[%c0_28, %c0_29] : memref<1x128xi32, #tpu.memory_space<vmem>>, vector<1x128xi32>
      %c0_30 = arith.constant 0 : index
      %c0_31 = arith.constant 0 : index
      %72 = vector.load %arg5[%c0_30, %c0_31] : memref<1x128xi32, #tpu.memory_space<vmem>>, vector<1x128xi32>
      %c0_32 = arith.constant 0 : index
      %c0_33 = arith.constant 0 : index
      %73 = vector.load %arg6[%c0_32, %c0_33] : memref<128x1xi32, #tpu.memory_space<vmem>>, vector<128x1xi32>
      %74 = tpu.iota {dimensions = array<i32: 0>} : vector<128x128xi32>
      %75 = vector.broadcast %71 : vector<1x128xi32> to vector<128x128xi32>
      %76 = arith.cmpi eq, %74, %75 : vector<128x128xi32>
      %77 = arith.extui %76 : vector<128x128xi1> to vector<128x128xi32>
      %78 = arith.sitofp %77 : vector<128x128xi32> to vector<128x128xf32>
      %79 = vector.broadcast %72 : vector<1x128xi32> to vector<128x128xi32>
      %80 = arith.cmpi eq, %74, %79 : vector<128x128xi32>
      %81 = arith.extui %80 : vector<128x128xi1> to vector<128x128xi32>
      %82 = arith.sitofp %81 : vector<128x128xi32> to vector<128x128xf32>
      %83 = arith.subf %78, %82 : vector<128x128xf32>
      %84 = arith.index_cast %arg1 : i32 to index
      %c0_34 = arith.constant 0 : index
      %c0_35 = arith.constant 0 : index
      %85 = vector.load %arg13[%84, %c0_34, %c0_35] : memref<1x128x128xf32, #tpu.memory_space<vmem>>, vector<1x128x128xf32>
      %86 = vector.shape_cast %85 : vector<1x128x128xf32> to vector<128x128xf32>
      %87 = vector.shape_cast %83 : vector<128x128xf32> to vector<1x128x128xf32>
      tpu.vector_store %arg13[%84, %c0_34, %c0_35], %87 {strides = array<i32>} : memref<1x128x128xf32, #tpu.memory_space<vmem>>, vector<1x128x128xf32>,
      %88 = tpu.iota {dimensions = array<i32: 1>} : vector<128x128xi32>
      %89 = vector.broadcast %73 : vector<128x1xi32> to vector<128x128xi32>
      %90 = arith.cmpi eq, %88, %89 : vector<128x128xi32>
      %91 = arith.extui %90 : vector<128x128xi1> to vector<128x128xi32>
      %92 = arith.sitofp %91 : vector<128x128xi32> to vector<128x128xf32>
      %93 = arith.index_cast %arg1 : i32 to index
      %c0_36 = arith.constant 0 : index
      %c0_37 = arith.constant 0 : index
      %94 = vector.load %arg14[%93, %c0_36, %c0_37] : memref<1x128x128xf32, #tpu.memory_space<vmem>>, vector<1x128x128xf32>
      %95 = vector.shape_cast %94 : vector<1x128x128xf32> to vector<128x128xf32>
      %96 = vector.shape_cast %92 : vector<128x128xf32> to vector<1x128x128xf32>
      tpu.vector_store %arg14[%93, %c0_36, %c0_37], %96 {strides = array<i32>} : memref<1x128x128xf32, #tpu.memory_space<vmem>>, vector<1x128x128xf32>,
    } else {
    }
    %11 = arith.index_cast %arg1 : i32 to index
    %c0 = arith.constant 0 : index
    %c0_6 = arith.constant 0 : index
    %12 = vector.load %arg13[%11, %c0, %c0_6] : memref<1x128x128xf32, #tpu.memory_space<vmem>>, vector<1x128x128xf32>
    %13 = vector.shape_cast %12 : vector<1x128x128xf32> to vector<128x128xf32>
    %14 = arith.index_cast %arg1 : i32 to index
    %c0_7 = arith.constant 0 : index
    %c0_8 = arith.constant 0 : index
    %15 = vector.load %arg14[%14, %c0_7, %c0_8] : memref<1x128x128xf32, #tpu.memory_space<vmem>>, vector<1x128x128xf32>
    %16 = vector.shape_cast %15 : vector<1x128x128xf32> to vector<128x128xf32>
    %c0_9 = arith.constant 0 : index
    %c0_10 = arith.constant 0 : index
    %17 = vector.load %arg11[%c0_9, %c0_10] : memref<3x128xf32, #tpu.memory_space<vmem>>, vector<3x128xf32>
    %cst = arith.constant dense<0.000000e+00> : vector<3x128xf32>
    %18 = tpu.matmul %17, %13, %cst {dimension_numbers = #tpu.dot_dimension_numbers<[1], [0], [0], [1], [0, 0, 1, 1], [], []>} : vector<3x128xf32>, vector<128x128xf32>, vector<3x128xf32> -> vector<3x128xf32>
    %19 = arith.mulf %18, %18 : vector<3x128xf32>
    %cst_11 = arith.constant dense<0.000000e+00> : vector<128xf32>
    %20 = vector.multi_reduction <add>, %19, %cst_11 [0] : vector<3x128xf32> to vector<128xf32>
    %21 = vector.shape_cast %20 : vector<128xf32> to vector<1x128xf32>
    %22 = math.sqrt %21 : vector<1x128xf32>
    %c0_12 = arith.constant 0 : index
    %c0_13 = arith.constant 0 : index
    %c0_14 = arith.constant 0 : index
    %23 = vector.load %arg8[%c0_12, %c0_13, %c0_14] : memref<1x32x5xf32, #tpu.memory_space<vmem>>, vector<1x32x5xf32>
    %24 = vector.shape_cast %23 : vector<1x32x5xf32> to vector<32x5xf32>
    %25 = vector.extract_strided_slice %24 {offsets = [0, 0], sizes = [32, 1], strides = [1, 1]} : vector<32x5xf32> to vector<32x1xf32>
    %26 = vector.extract_strided_slice %24 {offsets = [0, 1], sizes = [32, 1], strides = [1, 1]} : vector<32x5xf32> to vector<32x1xf32>
    %27 = vector.extract_strided_slice %24 {offsets = [0, 2], sizes = [32, 1], strides = [1, 1]} : vector<32x5xf32> to vector<32x1xf32>
    %c0_15 = arith.constant 0 : index
    %c0_16 = arith.constant 0 : index
    %28 = vector.load %arg7[%c0_15, %c0_16] : memref<2x128xf32, #tpu.memory_space<vmem>>, vector<2x128xf32>
    %29 = vector.broadcast %25 : vector<32x1xf32> to vector<32x128xf32>
    %30 = vector.broadcast %22 : vector<1x128xf32> to vector<32x128xf32>
    %31 = arith.mulf %29, %30 : vector<32x128xf32>
    %32 = vector.broadcast %26 : vector<32x1xf32> to vector<32x128xf32>
    %33 = arith.addf %31, %32 : vector<32x128xf32>
    %34 = vector.extract_strided_slice %24 {offsets = [0, 3], sizes = [32, 1], strides = [1, 1]} : vector<32x5xf32> to vector<32x1xf32>
    %35 = vector.extract_strided_slice %28 {offsets = [0, 0], sizes = [1, 128], strides = [1, 1]} : vector<2x128xf32> to vector<1x128xf32>
    %36 = vector.broadcast %34 : vector<32x1xf32> to vector<32x128xf32>
    %37 = vector.broadcast %35 : vector<1x128xf32> to vector<32x128xf32>
    %38 = arith.mulf %36, %37 : vector<32x128xf32>
    %39 = arith.addf %33, %38 : vector<32x128xf32>
    %40 = vector.extract_strided_slice %24 {offsets = [0, 4], sizes = [32, 1], strides = [1, 1]} : vector<32x5xf32> to vector<32x1xf32>
    %41 = vector.extract_strided_slice %28 {offsets = [1, 0], sizes = [1, 128], strides = [1, 1]} : vector<2x128xf32> to vector<1x128xf32>
    %42 = vector.broadcast %40 : vector<32x1xf32> to vector<32x128xf32>
    %43 = vector.broadcast %41 : vector<1x128xf32> to vector<32x128xf32>
    %44 = arith.mulf %42, %43 : vector<32x128xf32>
    %45 = arith.addf %39, %44 : vector<32x128xf32>
    %46 = arith.negf %45 : vector<32x128xf32>
    %47 = math.exp %46 : vector<32x128xf32>
    %cst_17 = arith.constant 1.000000e+00 : f32
    %48 = vector.broadcast %cst_17 : f32 to vector<32x128xf32>
    %49 = arith.addf %48, %47 : vector<32x128xf32>
    %50 = arith.divf %48, %49 : vector<32x128xf32>
    %51 = arith.mulf %45, %50 : vector<32x128xf32>
    %52 = vector.broadcast %27 : vector<32x1xf32> to vector<32x128xf32>
    %53 = arith.mulf %51, %52 : vector<32x128xf32>
    %cst_18 = arith.constant dense<0.000000e+00> : vector<128xf32>
    %54 = vector.multi_reduction <add>, %53, %cst_18 [0] : vector<32x128xf32> to vector<128xf32>
    %55 = vector.shape_cast %54 : vector<128xf32> to vector<1x128xf32>
    %56 = math.tanh %55 : vector<1x128xf32>
    %57 = vector.broadcast %56 : vector<1x128xf32> to vector<3x128xf32>
    %58 = arith.mulf %18, %57 : vector<3x128xf32>
    %c0_19 = arith.constant 0 : index
    %c0_20 = arith.constant 0 : index
    %59 = vector.load %arg12[%c0_19, %c0_20] : memref<3x128xf32, #tpu.memory_space<vmem>>, vector<3x128xf32>
    %cst_21 = arith.constant dense<0.000000e+00> : vector<3x128xf32>
    %60 = tpu.matmul %58, %16, %cst_21 {dimension_numbers = #tpu.dot_dimension_numbers<[1], [0], [0], [1], [0, 0, 1, 1], [], []>} : vector<3x128xf32>, vector<128x128xf32>, vector<3x128xf32> -> vector<3x128xf32>
    %61 = arith.addf %59, %60 : vector<3x128xf32>
    %c0_22 = arith.constant 0 : index
    %c0_23 = arith.constant 0 : index
    %62 = vector.load %arg12[%c0_22, %c0_23] : memref<3x128xf32, #tpu.memory_space<vmem>>, vector<3x128xf32>
    tpu.vector_store %arg12[%c0_22, %c0_23], %61 {strides = array<i32>} : memref<3x128xf32, #tpu.memory_space<vmem>>, vector<3x128xf32>,
    %c0_i32_24 = arith.constant 0 : i32
    %63 = arith.cmpi eq, %arg1, %c0_i32_24 : i32
    %64 = arith.extui %63 : i1 to i32
    %c0_i32_25 = arith.constant 0 : i32
    %65 = arith.cmpi ne, %64, %c0_i32_25 : i32
    scf.if %65 {
      %c0_28 = arith.constant 0 : index
      %c0_29 = arith.constant 0 : index
      %71 = vector.load %arg11[%c0_28, %c0_29] : memref<3x128xf32, #tpu.memory_space<vmem>>, vector<3x128xf32>
      %c0_30 = arith.constant 0 : index
      %c0_31 = arith.constant 0 : index
      %72 = vector.load %arg12[%c0_30, %c0_31] : memref<3x128xf32, #tpu.memory_space<vmem>>, vector<3x128xf32>
      %c0_32 = arith.constant 0 : index
      %c0_33 = arith.constant 0 : index
      %73 = vector.load %arg3[%c0_32, %c0_33] : memref<1x128xf32, #tpu.memory_space<vmem>>, vector<1x128xf32>
      %74 = vector.broadcast %73 : vector<1x128xf32> to vector<3x128xf32>
      %75 = arith.mulf %72, %74 : vector<3x128xf32>
      %76 = arith.addf %71, %75 : vector<3x128xf32>
      %c0_34 = arith.constant 0 : index
      %c0_35 = arith.constant 0 : index
      %c0_36 = arith.constant 0 : index
      %77 = vector.load %arg9[%c0_34, %c0_35, %c0_36] : memref<1x3x128xf32, #tpu.memory_space<vmem>>, vector<1x3x128xf32>
      %78 = vector.shape_cast %77 : vector<1x3x128xf32> to vector<3x128xf32>
      %79 = arith.addf %76, %78 : vector<3x128xf32>
      %c0_37 = arith.constant 0 : index
      %c0_38 = arith.constant 0 : index
      %80 = vector.load %arg11[%c0_37, %c0_38] : memref<3x128xf32, #tpu.memory_space<vmem>>, vector<3x128xf32>
      tpu.vector_store %arg11[%c0_37, %c0_38], %79 {strides = array<i32>} : memref<3x128xf32, #tpu.memory_space<vmem>>, vector<3x128xf32>,
    } else {
    }
    %c0_i32_26 = arith.constant 0 : i32
    %66 = arith.cmpi eq, %arg1, %c0_i32_26 : i32
    %c3_i32 = arith.constant 3 : i32
    %67 = arith.cmpi eq, %arg0, %c3_i32 : i32
    %68 = arith.andi %66, %67 : i1
    %69 = arith.extui %68 : i1 to i32
    %c0_i32_27 = arith.constant 0 : i32
    %70 = arith.cmpi ne, %69, %c0_i32_27 : i32
    scf.if %70 {
      %c0_28 = arith.constant 0 : index
      %c0_29 = arith.constant 0 : index
      %71 = vector.load %arg11[%c0_28, %c0_29] : memref<3x128xf32, #tpu.memory_space<vmem>>, vector<3x128xf32>
      %c0_30 = arith.constant 0 : index
      %c0_31 = arith.constant 0 : index
      %72 = vector.load %arg10[%c0_30, %c0_31] : memref<3x128xf32, #tpu.memory_space<vmem>>, vector<3x128xf32>
      tpu.vector_store %arg10[%c0_30, %c0_31], %71 {strides = array<i32>} : memref<3x128xf32, #tpu.memory_space<vmem>>, vector<3x128xf32>,
    } else {
    }
    return
  }
  func.func @transform_0(%arg0: i32, %arg1: i32) -> (i32, i32) {
    %c0_i32 = arith.constant 0 : i32
    %c0_i32_0 = arith.constant 0 : i32
    %c0_i32_1 = arith.constant 0 : i32
    return %c0_i32, %c0_i32_0 : i32, i32
  }
  func.func @transform_1(%arg0: i32, %arg1: i32) -> (i32, i32) {
    %c0_i32 = arith.constant 0 : i32
    %c0_i32_0 = arith.constant 0 : i32
    %c0_i32_1 = arith.constant 0 : i32
    return %c0_i32, %c0_i32_0 : i32, i32
  }
  func.func @transform_2(%arg0: i32, %arg1: i32) -> (i32, i32) {
    %c0_i32 = arith.constant 0 : i32
    %c0_i32_0 = arith.constant 0 : i32
    return %c0_i32, %arg1 : i32, i32
  }
  func.func @transform_3(%arg0: i32, %arg1: i32) -> (i32, i32) {
    %c0_i32 = arith.constant 0 : i32
    %c0_i32_0 = arith.constant 0 : i32
    return %c0_i32, %arg1 : i32, i32
  }
  func.func @transform_4(%arg0: i32, %arg1: i32) -> (i32, i32) {
    %c0_i32 = arith.constant 0 : i32
    %c0_i32_0 = arith.constant 0 : i32
    return %arg1, %c0_i32 : i32, i32
  }
  func.func @transform_5(%arg0: i32, %arg1: i32) -> (i32, i32) {
    %c0_i32 = arith.constant 0 : i32
    %c0_i32_0 = arith.constant 0 : i32
    return %c0_i32, %arg1 : i32, i32
  }
  func.func @transform_6(%arg0: i32, %arg1: i32) -> (i32, i32, i32) {
    %c0_i32 = arith.constant 0 : i32
    %c0_i32_0 = arith.constant 0 : i32
    %c0_i32_1 = arith.constant 0 : i32
    return %arg0, %c0_i32, %c0_i32_0 : i32, i32, i32
  }
  func.func @transform_7(%arg0: i32, %arg1: i32) -> (i32, i32, i32) {
    %c0_i32 = arith.constant 0 : i32
    %c0_i32_0 = arith.constant 0 : i32
    %c0_i32_1 = arith.constant 0 : i32
    return %arg0, %c0_i32, %c0_i32_0 : i32, i32, i32
  }
  func.func @transform_8(%arg0: i32, %arg1: i32) -> (i32, i32) {
    %c0_i32 = arith.constant 0 : i32
    %c0_i32_0 = arith.constant 0 : i32
    %c0_i32_1 = arith.constant 0 : i32
    return %c0_i32, %c0_i32_0 : i32, i32
  }
}

</mosaic_0001>

<bundles_post_ra>
// kernel: tpu_custom_call.1
= control target key start
LH: loop header
LB: loop body
LE: loop exit
PB: predicated region body
PF: predicated region fallthrough
CT: control target
= control target key end

     0   :  { %13 = vsyncpa [#allocation7], 0  ;;  %s1618_s27 = smov 0   ;;  %s1620_s28 = smov 0   ;;  %s2058_s0 = inlined_call_operand.vmem [shape: f32[3,128], index: 0, kind: input, shape index: {}]   ;;  %s2059_s1 = inlined_call_operand.vmem [shape: f32[1,128], index: 1, kind: input, shape index: {}]   ;;  %s2060_s2 = inlined_call_operand.vmem [shape: s32[1,128], index: 2, kind: input, shape index: {}]   ;;  %s2061_s3 = inlined_call_operand.vmem [shape: s32[1,128], index: 3, kind: input, shape index: {}]   ;;  %s2062_s4 = inlined_call_operand.vmem [shape: s32[128,1], index: 4, kind: input, shape index: {}]   ;;  %s2063_s5 = inlined_call_operand.vmem [shape: f32[2,128], index: 5, kind: input, shape index: {}]   ;;  %s2064_s6 = inlined_call_operand.vmem [shape: f32[4,32,5], index: 6, kind: input, shape index: {}]   ;;  %s2065_s7 = inlined_call_operand.vmem [shape: f32[4,3,128], index: 7, kind: input, shape index: {}]   ;;  %s2066_s8 = inlined_call_operand.hbm [shape: f32[3,128], index: 8, kind: output, shape index: {}]  }
   0x1   :  { %s1622_s29 = smov 0  }
   0x2 LB: > { %s1203_s30 = sadd.s32 4294967295, %s1560_s29   ;;  %s31_s9 = sadd.s32 1, %s1556_s28  ;;  %s1560_s29 = sphi %s1622_s29, %s19_s29   ;;  %s1556_s28 = sphi %s1620_s28, %s2069_s28   ;;  %s1552_s27 = sphi %s1618_s27, %s2068_s27  }
   0x3   : > { %p33_p0 = scmp.ge.s32.totalorder %s31_s9, 4  ;;  %p1210_p1 = scmp.ge.s32.totalorder %s1560_s29, 1 }
   0x4   : > { %p315_p2 = scmp.lt.s32.totalorder %s1560_s29, 5 }
   0x5   : > { %s2071_s9 = smov (%p33_p0, %s31_s9), 0 }
   0x6   : > { %p316_p3 = pnand %p1210_p1, %p315_p2 }
   0x7   : > { %p379_p4 = scmp.lt.s32.totalorder (!%p316_p3), %s1552_s27, 3  ;;  %p388_p5 = scmp.eq.s32.totalorder (!%p316_p3), %s1552_s27, 0 }
   0x8   : > { %319 = sbr.rel (%p316_p3) target bundleno = 793 (0x319), region = 52 }
   0xf   : > { %s380_s10 = scalar_select %p379_p4, %s1552_s27, 3 }
  0x10   : > { %393 = sbr.rel (!%p388_p5) target bundleno = 23 (0x17), region = 56  ;;  %v394_v0 = vld [vmem:[%s2058_s0] sm:$0x7] (%p388_p5) }
  0x11   : > { %s1276_s11 = sshll.u32 %s380_s10, 5  ;;  %s1213_s12 = sshll.u32 %s380_s10, 2  ;;  %395 = vst [vmem:[#allocation2] sm:$0x7] (%p388_p5), %v394_v0 }
  0x12   : > { %s1645_s15 = scalar_lea.vmem %s2064_s6, %s1276_s11  ;;  %s1650_s18 = scalar_lea.vmem %s2065_s7, %s1213_s12 }
  0x17 PF: > { %v1562_v1 = vmov 0.0   ;;  %p1215_p6 = scmp.ne.s32.totalorder %s1552_s27, 0 }
  0x18   : > { %399 = vst [vmem:[#allocation3] sm:$0x7] %v1562_v1  ;;  %v407_v2 = vld [vmem:[%s2062_s4 + $0x10] sm:$0xff] (!%p1215_p6)  ;;  %v405_v3 = vld [vmem:[%s2062_s4] sm:$0xff] (!%p1215_p6)  ;;  %v421_v4 = vlaneseq (!%p1215_p6)  ;;  %v1563_v5 = vmov (!%p1215_p6), 0   ;;  %v408_v7 = vld [vmem:[%s2062_s4 + $0x18] sm:$0xff] (!%p1215_p6) }
  0x19   : > { %402 = sbr.rel (%p1215_p6) target bundleno = 185 (0xb9), region = 64  ;;  %1473 = vset.pattern.permute.xlu1 (!%p1215_p6), %v1563_v5  ;;  %1472 = vset.pattern.permute.xlu0 (!%p1215_p6), %v1563_v5  ;;  %v406_v8 = vld [vmem:[%s2062_s4 + $0x8] sm:$0xff] (!%p1215_p6)  ;;  %v1216_v20 = vld [vmem:[%s2060_s2] ss:$0 sm:$0xff] (!%p1215_p6)  ;;  %v1564_v27 = vmov (!%p1215_p6), 0.0   ;;  %v412_v29 = vld [vmem:[%s2062_s4 + $0x38] sm:$0xff] (!%p1215_p6) }
  0x1a   : > { %585 = vperm.xlu1 (!%p1215_p6), %1473, %v407_v2   ;;  %579 = vperm.xlu0 (!%p1215_p6), %1472, %v405_v3   ;;  %v1664_v6 = vshrl.u32 (!%p1215_p6), %v421_v4, 7  ;;  %v410_v21 = vld [vmem:[%s2062_s4 + $0x28] sm:$0xff] (!%p1215_p6)  ;;  %v409_v22 = vld [vmem:[%s2062_s4 + $0x20] sm:$0xff] (!%p1215_p6)  ;;  %v411_v30 = vld [vmem:[%s2062_s4 + $0x30] sm:$0xff] (!%p1215_p6) }
  0x1b   : > { %v1233_v34 = vld [vmem:[%s2061_s3] ss:$0 sm:$0xff] (!%p1215_p6)  ;;  %v414_v43 = vld [vmem:[%s2062_s4 + $0x48] sm:$0xff] (!%p1215_p6)  ;;  %v416_v50 = vld [vmem:[%s2062_s4 + $0x58] sm:$0xff] (!%p1215_p6) }
  0x1c   : > { %v1673_v9 = vadd.s32 (!%p1215_p6), 8, %v1664_v6  ;;  %v1676_v10 = vadd.s32 (!%p1215_p6), 16, %v1664_v6  ;;  %v1679_v11 = vadd.s32 (!%p1215_p6), 24, %v1664_v6  ;;  %v1682_v12 = vadd.s32 (!%p1215_p6), 32, %v1664_v6  ;;  %v413_v44 = vld [vmem:[%s2062_s4 + $0x40] sm:$0xff] (!%p1215_p6)  ;;  %v415_v51 = vld [vmem:[%s2062_s4 + $0x50] sm:$0xff] (!%p1215_p6) }
  0x1d   : > { %v1685_v13 = vadd.s32 (!%p1215_p6), 40, %v1664_v6  ;;  %v1688_v14 = vadd.s32 (!%p1215_p6), 48, %v1664_v6  ;;  %v1691_v15 = vadd.s32 (!%p1215_p6), 56, %v1664_v6  ;;  %v1694_v16 = vadd.s32 (!%p1215_p6), 64, %v1664_v6  ;;  %v418_v63 = vld [vmem:[%s2062_s4 + $0x68] sm:$0xff] (!%p1215_p6)  ;;  %v417_v0 = vld [vmem:[%s2062_s4 + $0x60] sm:$0xff] (!%p1215_p6) }
  0x1e   : > { %588 = vperm.xlu1 (!%p1215_p6), %1473, %v408_v7   ;;  %582 = vperm.xlu0 (!%p1215_p6), %1472, %v406_v8   ;;  %v1697_v17 = vadd.s32 (!%p1215_p6), 72, %v1664_v6  ;;  %v1700_v18 = vadd.s32 (!%p1215_p6), 80, %v1664_v6  ;;  %v1703_v19 = vadd.s32 (!%p1215_p6), 88, %v1664_v6  ;;  %v1715_v23 = vadd.s32 (!%p1215_p6), 96, %v1664_v6 }
  0x1f   : > { %v1718_v24 = vadd.s32 (!%p1215_p6), 104, %v1664_v6  ;;  %v1721_v25 = vadd.s32 (!%p1215_p6), 112, %v1664_v6  ;;  %v1724_v26 = vadd.s32 (!%p1215_p6), 120, %v1664_v6  ;;  %vm442_vm0 = vcmp.eq.s32.totalorder (!%p1215_p6), %v1664_v6, %v1216_v20 }
  0x20   : > { %vm443_vm1 = vcmp.eq.s32.totalorder %v1673_v9, %v1216_v20  ;;  %vm444_vm2 = vcmp.eq.s32.totalorder %v1676_v10, %v1216_v20  ;;  %vm445_vm3 = vcmp.eq.s32.totalorder %v1679_v11, %v1216_v20  ;;  %vm446_vm4 = vcmp.eq.s32.totalorder %v1682_v12, %v1216_v20 }
  0x21   : > { %vm447_vm5 = vcmp.eq.s32.totalorder %v1685_v13, %v1216_v20  ;;  %vm448_vm6 = vcmp.eq.s32.totalorder %v1688_v14, %v1216_v20  ;;  %vm449_vm7 = vcmp.eq.s32.totalorder %v1691_v15, %v1216_v20  ;;  %vm450_vm8 = vcmp.eq.s32.totalorder %v1694_v16, %v1216_v20 }
  0x22   : > { %594 = vperm.xlu1 %1473, %v410_v21   ;;  %591 = vperm.xlu0 %1472, %v409_v22   ;;  %vm451_vm9 = vcmp.eq.s32.totalorder %v1697_v17, %v1216_v20  ;;  %vm452_vm10 = vcmp.eq.s32.totalorder %v1700_v18, %v1216_v20  ;;  %v1738_v28 = vsel %vm442_vm0, 1.0, %v1564_v27  ;;  %vm453_vm11 = vcmp.eq.s32.totalorder %v1703_v19, %v1216_v20 }
  0x23   : > { %vm454_vm12 = vcmp.eq.s32.totalorder %v1715_v23, %v1216_v20  ;;  %vm455_vm13 = vcmp.eq.s32.totalorder %v1718_v24, %v1216_v20  ;;  %vm456_vm14 = vcmp.eq.s32.totalorder %v1721_v25, %v1216_v20  ;;  %vm457_vm15 = vcmp.eq.s32.totalorder %v1724_v26, %v1216_v20 }
  0x24   : > { %v1754_v31 = vsel %vm443_vm1, 1.0, %v1564_v27  ;;  %v1759_v32 = vsel %vm444_vm2, 1.0, %v1564_v27  ;;  %v1764_v33 = vsel %vm445_vm3, 1.0, %v1564_v27  ;;  %v1772_v35 = vsel %vm446_vm4, 1.0, %v1564_v27 }
  0x25   : > { %v1777_v36 = vsel %vm447_vm5, 1.0, %v1564_v27  ;;  %v1782_v37 = vsel %vm448_vm6, 1.0, %v1564_v27  ;;  %v1787_v38 = vsel %vm449_vm7, 1.0, %v1564_v27  ;;  %v1792_v39 = vsel %vm450_vm8, 1.0, %v1564_v27 }
  0x26   : > { %600 = vperm.xlu1 %1473, %v412_v29   ;;  %597 = vperm.xlu0 %1472, %v411_v30   ;;  %v1797_v40 = vsel %vm451_vm9, 1.0, %v1564_v27  ;;  %v1802_v41 = vsel %vm452_vm10, 1.0, %v1564_v27  ;;  %v1807_v42 = vsel %vm453_vm11, 1.0, %v1564_v27  ;;  %v1818_v45 = vsel %vm454_vm12, 1.0, %v1564_v27 }
  0x27   : > { %v1823_v46 = vsel %vm455_vm13, 1.0, %v1564_v27  ;;  %v1828_v47 = vsel %vm456_vm14, 1.0, %v1564_v27  ;;  %v1833_v48 = vsel %vm457_vm15, 1.0, %v1564_v27  ;;  %vm494_vm0 = vcmp.eq.s32.totalorder %v1664_v6, %v1233_v34 }
  0x28   : > { %vm495_vm1 = vcmp.eq.s32.totalorder %v1673_v9, %v1233_v34  ;;  %vm496_vm2 = vcmp.eq.s32.totalorder %v1676_v10, %v1233_v34  ;;  %vm497_vm3 = vcmp.eq.s32.totalorder %v1679_v11, %v1233_v34  ;;  %vm498_vm4 = vcmp.eq.s32.totalorder %v1682_v12, %v1233_v34 }
  0x29   : > { %vm499_vm5 = vcmp.eq.s32.totalorder %v1685_v13, %v1233_v34  ;;  %vm500_vm6 = vcmp.eq.s32.totalorder %v1688_v14, %v1233_v34  ;;  %vm501_vm7 = vcmp.eq.s32.totalorder %v1691_v15, %v1233_v34  ;;  %vm502_vm8 = vcmp.eq.s32.totalorder %v1694_v16, %v1233_v34 }
  0x2a   : > { %606 = vperm.xlu1 %1473, %v414_v43   ;;  %603 = vperm.xlu0 %1472, %v413_v44   ;;  %vm503_vm9 = vcmp.eq.s32.totalorder %v1697_v17, %v1233_v34  ;;  %vm504_vm10 = vcmp.eq.s32.totalorder %v1700_v18, %v1233_v34  ;;  %v1234_v49 = vsel %vm494_vm0, 1.0, %v1564_v27  ;;  %vm505_vm11 = vcmp.eq.s32.totalorder %v1703_v19, %v1233_v34  ;;  %v420_v18 = vld [vmem:[%s2062_s4 + $0x78] sm:$0xff]  ;;  %v419_v19 = vld [vmem:[%s2062_s4 + $0x70] sm:$0xff] }
  0x2b   : > { %vm506_vm12 = vcmp.eq.s32.totalorder %v1715_v23, %v1233_v34  ;;  %vm507_vm13 = vcmp.eq.s32.totalorder %v1718_v24, %v1233_v34  ;;  %vm508_vm14 = vcmp.eq.s32.totalorder %v1721_v25, %v1233_v34  ;;  %vm509_vm15 = vcmp.eq.s32.totalorder %v1724_v26, %v1233_v34 }
  0x2c   : > { %v1235_v52 = vsel %vm495_vm1, 1.0, %v1564_v27  ;;  %v1236_v53 = vsel %vm496_vm2, 1.0, %v1564_v27  ;;  %v1237_v54 = vsel %vm497_vm3, 1.0, %v1564_v27  ;;  %v1238_v55 = vsel %vm498_vm4, 1.0, %v1564_v27 }
  0x2d   : > { %v1239_v56 = vsel %vm499_vm5, 1.0, %v1564_v27  ;;  %v1240_v57 = vsel %vm500_vm6, 1.0, %v1564_v27  ;;  %v1241_v58 = vsel %vm501_vm7, 1.0, %v1564_v27  ;;  %v1242_v59 = vsel %vm502_vm8, 1.0, %v1564_v27 }
  0x2e   : > { %612 = vperm.xlu1 %1473, %v416_v50   ;;  %609 = vperm.xlu0 %1472, %v415_v51   ;;  %v1243_v60 = vsel %vm503_vm9, 1.0, %v1564_v27  ;;  %v1244_v61 = vsel %vm504_vm10, 1.0, %v1564_v27  ;;  %v1245_v62 = vsel %vm505_vm11, 1.0, %v1564_v27  ;;  %v1246_v2 = vsel %vm506_vm12, 1.0, %v1564_v27 }
  0x2f   : > { %v1247_v3 = vsel %vm507_vm13, 1.0, %v1564_v27  ;;  %v1248_v5 = vsel %vm508_vm14, 1.0, %v1564_v27  ;;  %v1249_v6 = vsel %vm509_vm15, 1.0, %v1564_v27  ;;  %v542_v7 = vsub.f32 %v1738_v28, %v1234_v49 }
  0x30   : > { %v543_v8 = vsub.f32 %v1754_v31, %v1235_v52  ;;  %v544_v9 = vsub.f32 %v1759_v32, %v1236_v53  ;;  %v545_v10 = vsub.f32 %v1764_v33, %v1237_v54  ;;  %v546_v11 = vsub.f32 %v1772_v35, %v1238_v55 }
  0x31   : > { %v547_v12 = vsub.f32 %v1777_v36, %v1239_v56  ;;  %v548_v13 = vsub.f32 %v1782_v37, %v1240_v57  ;;  %v549_v14 = vsub.f32 %v1787_v38, %v1241_v58  ;;  %v550_v15 = vsub.f32 %v1792_v39, %v1242_v59  ;;  %560 = vst [vmem:[#allocation4] sm:$0xff] %v542_v7 }
  0x32   : > { %618 = vperm.xlu1 %1473, %v418_v63   ;;  %615 = vperm.xlu0 %1472, %v417_v0   ;;  %v551_v16 = vsub.f32 %v1797_v40, %v1243_v60  ;;  %v552_v17 = vsub.f32 %v1802_v41, %v1244_v61  ;;  %561 = vst [vmem:[#allocation4 + $0x8] sm:$0xff] %v543_v8  ;;  %562 = vst [vmem:[#allocation4 + $0x10] sm:$0xff] %v544_v9  ;;  %v1932_v25 = vand.u32 127, %v421_v4 }
  0x33   : > { %563 = vst [vmem:[#allocation4 + $0x18] sm:$0xff] %v545_v10  ;;  %v553_v20 = vsub.f32 %v1807_v42, %v1245_v62  ;;  %v554_v21 = vsub.f32 %v1818_v45, %v1246_v2  ;;  %v555_v22 = vsub.f32 %v1823_v46, %v1247_v3  ;;  %v556_v23 = vsub.f32 %v1828_v47, %v1248_v5 }
  0x34   : > { %564 = vst [vmem:[#allocation4 + $0x20] sm:$0xff] %v546_v11  ;;  %565 = vst [vmem:[#allocation4 + $0x28] sm:$0xff] %v547_v12  ;;  %v557_v24 = vsub.f32 %v1833_v48, %v1249_v6 }
  0x35   : > { %566 = vst [vmem:[#allocation4 + $0x30] sm:$0xff] %v548_v13  ;;  %567 = vst [vmem:[#allocation4 + $0x38] sm:$0xff] %v549_v14 }
  0x36   : > { %568 = vst [vmem:[#allocation4 + $0x40] sm:$0xff] %v550_v15  ;;  %569 = vst [vmem:[#allocation4 + $0x48] sm:$0xff] %v551_v16  ;;  %624 = vperm.xlu1 %1473, %v420_v18   ;;  %621 = vperm.xlu0 %1472, %v419_v19  }
  0x37   : > { %570 = vst [vmem:[#allocation4 + $0x50] sm:$0xff] %v552_v17  ;;  %571 = vst [vmem:[#allocation4 + $0x58] sm:$0xff] %v553_v20 }
  0x38   : > { %572 = vst [vmem:[#allocation4 + $0x60] sm:$0xff] %v554_v21  ;;  %573 = vst [vmem:[#allocation4 + $0x68] sm:$0xff] %v555_v22 }
  0x39   : > { %574 = vst [vmem:[#allocation4 + $0x70] sm:$0xff] %v556_v23  ;;  %575 = vst [vmem:[#allocation4 + $0x78] sm:$0xff] %v557_v24 }
  0x99   : > { %v586_v26 = vpop.permute.xlu1 %585  ;;  %v580_v28 = vpop.permute.xlu0 %579 }
  0x9a   : > { %vm628_vm0 = vcmp.eq.s32.totalorder %v1932_v25, %v586_v26  ;;  %vm626_vm1 = vcmp.eq.s32.totalorder %v1932_v25, %v580_v28 }
  0x9b   : > { %v1252_v29 = vsel %vm628_vm0, 1.0, %v1564_v27  ;;  %v1250_v30 = vsel %vm626_vm1, 1.0, %v1564_v27 }
  0x9c   : > { %677 = vst [vmem:[#allocation5 + $0x10] sm:$0xff] %v1252_v29  ;;  %675 = vst [vmem:[#allocation5] sm:$0xff] %v1250_v30 }
  0x9d   : > { %v589_v31 = vpop.permute.xlu1 %588  ;;  %v583_v32 = vpop.permute.xlu0 %582 }
  0x9e   : > { %vm629_vm2 = vcmp.eq.s32.totalorder %v1932_v25, %v589_v31  ;;  %vm627_vm3 = vcmp.eq.s32.totalorder %v1932_v25, %v583_v32 }
  0x9f   : > { %v1253_v4 = vsel %vm629_vm2, 1.0, %v1564_v27  ;;  %v1251_v33 = vsel %vm627_vm3, 1.0, %v1564_v27 }
  0xa0   : > { %678 = vst [vmem:[#allocation5 + $0x18] sm:$0xff] %v1253_v4  ;;  %676 = vst [vmem:[#allocation5 + $0x8] sm:$0xff] %v1251_v33 }
  0xa1   : > { %v595_v34 = vpop.permute.xlu1 %594  ;;  %v592_v35 = vpop.permute.xlu0 %591 }
  0xa2   : > { %vm631_vm4 = vcmp.eq.s32.totalorder %v1932_v25, %v595_v34  ;;  %vm630_vm5 = vcmp.eq.s32.totalorder %v1932_v25, %v592_v35 }
  0xa3   : > { %v1255_v36 = vsel %vm631_vm4, 1.0, %v1564_v27  ;;  %v1254_v37 = vsel %vm630_vm5, 1.0, %v1564_v27 }
  0xa4   : > { %680 = vst [vmem:[#allocation5 + $0x28] sm:$0xff] %v1255_v36  ;;  %679 = vst [vmem:[#allocation5 + $0x20] sm:$0xff] %v1254_v37 }
  0xa5   : > { %v601_v38 = vpop.permute.xlu1 %600  ;;  %v598_v39 = vpop.permute.xlu0 %597 }
  0xa6   : > { %vm633_vm6 = vcmp.eq.s32.totalorder %v1932_v25, %v601_v38  ;;  %vm632_vm7 = vcmp.eq.s32.totalorder %v1932_v25, %v598_v39 }
  0xa7   : > { %v1257_v40 = vsel %vm633_vm6, 1.0, %v1564_v27  ;;  %v1256_v41 = vsel %vm632_vm7, 1.0, %v1564_v27 }
  0xa8   : > { %682 = vst [vmem:[#allocation5 + $0x38] sm:$0xff] %v1257_v40  ;;  %681 = vst [vmem:[#allocation5 + $0x30] sm:$0xff] %v1256_v41 }
  0xa9   : > { %v607_v42 = vpop.permute.xlu1 %606  ;;  %v604_v43 = vpop.permute.xlu0 %603 }
  0xaa   : > { %vm635_vm8 = vcmp.eq.s32.totalorder %v1932_v25, %v607_v42  ;;  %vm634_vm9 = vcmp.eq.s32.totalorder %v1932_v25, %v604_v43 }
  0xab   : > { %v1259_v44 = vsel %vm635_vm8, 1.0, %v1564_v27  ;;  %v1258_v45 = vsel %vm634_vm9, 1.0, %v1564_v27 }
  0xac   : > { %684 = vst [vmem:[#allocation5 + $0x48] sm:$0xff] %v1259_v44  ;;  %683 = vst [vmem:[#allocation5 + $0x40] sm:$0xff] %v1258_v45 }
  0xad   : > { %v613_v46 = vpop.permute.xlu1 %612  ;;  %v610_v47 = vpop.permute.xlu0 %609 }
  0xae   : > { %vm637_vm10 = vcmp.eq.s32.totalorder %v1932_v25, %v613_v46  ;;  %vm636_vm11 = vcmp.eq.s32.totalorder %v1932_v25, %v610_v47 }
  0xaf   : > { %v1261_v48 = vsel %vm637_vm10, 1.0, %v1564_v27  ;;  %v1260_v49 = vsel %vm636_vm11, 1.0, %v1564_v27 }
  0xb0   : > { %686 = vst [vmem:[#allocation5 + $0x58] sm:$0xff] %v1261_v48  ;;  %685 = vst [vmem:[#allocation5 + $0x50] sm:$0xff] %v1260_v49 }
  0xb1   : > { %v619_v50 = vpop.permute.xlu1 %618  ;;  %v616_v51 = vpop.permute.xlu0 %615 }
  0xb2   : > { %vm639_vm12 = vcmp.eq.s32.totalorder %v1932_v25, %v619_v50  ;;  %vm638_vm13 = vcmp.eq.s32.totalorder %v1932_v25, %v616_v51 }
  0xb3   : > { %v1263_v52 = vsel %vm639_vm12, 1.0, %v1564_v27  ;;  %v1262_v53 = vsel %vm638_vm13, 1.0, %v1564_v27 }
  0xb4   : > { %688 = vst [vmem:[#allocation5 + $0x68] sm:$0xff] %v1263_v52  ;;  %687 = vst [vmem:[#allocation5 + $0x60] sm:$0xff] %v1262_v53 }
  0xb5   : > { %v625_v54 = vpop.permute.xlu1 %624  ;;  %v622_v55 = vpop.permute.xlu0 %621 }
  0xb6   : > { %vm641_vm14 = vcmp.eq.s32.totalorder %v1932_v25, %v625_v54  ;;  %vm640_vm15 = vcmp.eq.s32.totalorder %v1932_v25, %v622_v55 }
  0xb7   : > { %v1265_v56 = vsel %vm641_vm14, 1.0, %v1564_v27  ;;  %v1264_v57 = vsel %vm640_vm15, 1.0, %v1564_v27 }
  0xb8   : > { %690 = vst [vmem:[#allocation5 + $0x78] sm:$0xff] %v1265_v56  ;;  %689 = vst [vmem:[#allocation5 + $0x70] sm:$0xff] %v1264_v57 }
  0xb9 PF: > { %v693_v58 = vld [vmem:[#allocation4] sm:$0xff]  ;;  %v694_v59 = vld [vmem:[#allocation4 + $0x8] sm:$0xff]  ;;  %v695_v60 = vld [vmem:[#allocation4 + $0x10] sm:$0xff]  ;;  %v1565_v61 = vmov 0.0|0.0   ;;  %vm1566_vm0 = vmmov 0   ;;  %v1567_v0 = vmov 0  }
  0xba   : > { %1383 = vmatprep.subr.bf16.mxu0 %v1565_v61  ;;  %v1384_v62 = vpack.c.bf16 %v694_v59, %v693_v58  ;;  %v696_v63 = vld [vmem:[#allocation4 + $0x18] sm:$0xff]  ;;  %1345 = vmatprep.mubr.msk.f32.mxu0 %vm1566_vm0, %v1562_v1  ;;  %v1568_v2 = vmov 1   ;;  %v697_v3 = vld [vmem:[#allocation4 + $0x20] sm:$0xff]  ;;  %v698_v5 = vld [vmem:[#allocation4 + $0x28] sm:$0xff]  ;;  %v1569_v15 = vmov 3   ;;  %v1570_v25 = vmov 4  }
  0xbb   : > { %1474 = vset.pattern.permute.xlu1 %v1567_v0  ;;  %1476 = vset.pattern.permute.xlu0 %v1568_v2  ;;  %v1387_v27 = vpack.c.bf16 %v696_v63, %v695_v60  ;;  %v1973_v6 = vld [vmem:[%s1645_s15 + $0x10] sm:$0xff]  ;;  %v1977_v7 = vld [vmem:[%s1645_s15 + $0x8] sm:$0xff]  ;;  %v1390_v8 = vpack.c.bf16 %v698_v5, %v697_v3  ;;  %v699_v9 = vld [vmem:[#allocation4 + $0x30] sm:$0xff]  ;;  %v1571_v29 = vmov 2   ;;  %vm798_vm1 = vcmask 1042432   ;;  %p1067_p7 = scmp.eq.s32.totalorder %s1552_s27, 3 }
  0xbc   : > { %1385 = vmatpush3.bf16.msra.mxu0 %v1384_v62  ;;  %1407 = vmatprep.subr.bf16.mxu1 %v1565_v61  ;;  %v700_v10 = vld [vmem:[#allocation4 + $0x38] sm:$0xff]  ;;  %v702_v13 = vld [vmem:[#allocation4 + $0x48] sm:$0xff]  ;;  %v703_v16 = vld [vmem:[#allocation4 + $0x50] sm:$0xff] }
  0xbd   : > { %1386 = vmatprep.subr.bf16.mxu0 %v1565_v61  ;;  %1380 = vmatprep.mubr.msk.f32.mxu1 %vm1566_vm0, %v1562_v1  ;;  %v813_v11 = vld [vmem:[%s1645_s15] sm:$0xff]  ;;  %v1393_v12 = vpack.c.bf16 %v700_v10, %v699_v9  ;;  %v701_v1 = vld [vmem:[#allocation4 + $0x40] sm:$0xff]  ;;  %v816_v18 = vld [vmem:[%s1645_s15 + $0x18] sm:$0xff]  ;;  %v878_v10 = vlaneseq }
  0xbe   : > { %830 = vperm.xlu1 %1474, %v1973_v6   ;;  %847 = vperm.xlu0 %1476, %v1977_v7   ;;  %v1396_v14 = vpack.c.bf16 %v702_v13, %v701_v1  ;;  %v704_v17 = vld [vmem:[#allocation4 + $0x58] sm:$0xff]  ;;  %v705_v20 = vld [vmem:[#allocation4 + $0x60] sm:$0xff]  ;;  %v706_v21 = vld [vmem:[#allocation4 + $0x68] sm:$0xff] }
  0xbf   : > { %v1399_v19 = vpack.c.bf16 %v704_v17, %v703_v16  ;;  %v1402_v22 = vpack.c.bf16 %v706_v21, %v705_v20  ;;  %v707_v23 = vld [vmem:[#allocation4 + $0x70] sm:$0xff]  ;;  %v708_v24 = vld [vmem:[#allocation4 + $0x78] sm:$0xff]  ;;  %v710_v30 = vld [vmem:[#allocation5] sm:$0xff]  ;;  %v879_v1 = vshrl.u32 %v878_v10, 7 }
  0xc0   : > { %1388 = vmatpush3.bf16.msra.mxu0 %v1387_v27  ;;  %v1405_v26 = vpack.c.bf16 %v708_v24, %v707_v23  ;;  %v726_v28 = vld [vmem:[#allocation2] sm:$0x7]  ;;  %v711_v31 = vld [vmem:[#allocation5 + $0x8] sm:$0xff]  ;;  %v712_v4 = vld [vmem:[#allocation5 + $0x10] sm:$0xff] }
  0xc1   : > { %1389 = vmatprep.subr.bf16.mxu0 %v1565_v61  ;;  %v1408_v32 = vpack.c.bf16 %v711_v31, %v710_v30  ;;  %v713_v33 = vld [vmem:[#allocation5 + $0x18] sm:$0xff]  ;;  %v714_v35 = vld [vmem:[#allocation5 + $0x20] sm:$0xff]  ;;  %v715_v36 = vld [vmem:[#allocation5 + $0x28] sm:$0xff] }
  0xc2   : > { %1475 = vset.pattern.permute.xlu1 %v1568_v2  ;;  %1477 = vset.pattern.permute.xlu0 %v1567_v0  ;;  %v1411_v34 = vpack.c.bf16 %v713_v33, %v712_v4  ;;  %v1414_v37 = vpack.c.bf16 %v715_v36, %v714_v35  ;;  %v716_v38 = vld [vmem:[#allocation5 + $0x30] sm:$0xff]  ;;  %v717_v39 = vld [vmem:[#allocation5 + $0x38] sm:$0xff]  ;;  %v718_v41 = vld [vmem:[#allocation5 + $0x40] sm:$0xff] }
  0xc3   : > { %843 = vperm.xlu1 %1475, %v813_v11   ;;  %820 = vperm.xlu0 %1477, %v813_v11   ;;  %v1417_v40 = vpack.c.bf16 %v717_v39, %v716_v38  ;;  %v719_v42 = vld [vmem:[#allocation5 + $0x48] sm:$0xff]  ;;  %v720_v44 = vld [vmem:[#allocation5 + $0x50] sm:$0xff]  ;;  %v721_v45 = vld [vmem:[#allocation5 + $0x58] sm:$0xff] }
  0xc4   : > { %1391 = vmatpush3.bf16.msra.mxu0 %v1390_v8  ;;  %1409 = vmatpush3.bf16.msra.mxu1 %v1408_v32  ;;  %v1420_v43 = vpack.c.bf16 %v719_v42, %v718_v41  ;;  %v1423_v46 = vpack.c.bf16 %v721_v45, %v720_v44  ;;  %v722_v47 = vld [vmem:[#allocation5 + $0x60] sm:$0xff]  ;;  %v723_v48 = vld [vmem:[#allocation5 + $0x68] sm:$0xff]  ;;  %v724_v50 = vld [vmem:[#allocation5 + $0x70] sm:$0xff] }
  0xc5   : > { %1392 = vmatprep.subr.bf16.mxu0 %v1565_v61  ;;  %1410 = vmatprep.subr.bf16.mxu1 %v1565_v61  ;;  %v1426_v49 = vpack.c.bf16 %v723_v48, %v722_v47  ;;  %v725_v51 = vld [vmem:[#allocation5 + $0x78] sm:$0xff] }
  0xc6   : > { %v1429_v52 = vpack.c.bf16 %v725_v51, %v724_v50 }
  0xc7   : > { %1478 = vset.pattern.permute.xlu1 %v1569_v15  ;;  %825 = vperm.xlu0 %1477, %v1977_v7  }
  0xc8   : > { %1394 = vmatpush3.bf16.msra.mxu0 %v1393_v12  ;;  %863 = vperm.xlu1 %1478, %v813_v11  }
  0xc9   : > { %1395 = vmatprep.subr.bf16.mxu0 %v1565_v61  ;;  %1412 = vmatpush3.bf16.msra.mxu1 %v1411_v34 }
  0xca   : > { %1413 = vmatprep.subr.bf16.mxu1 %v1565_v61 }
  0xcb   : > { %835 = vperm.xlu0 %1477, %v816_v18  }
  0xcc   : > { %1397 = vmatpush3.bf16.msra.mxu0 %v1396_v14  ;;  %867 = vperm.xlu1 %1478, %v1977_v7   ;;  %v880_v14 = vsub.s32 0, %v879_v1 }
  0xcd   : > { %1398 = vmatprep.subr.bf16.mxu0 %v1565_v61  ;;  %1415 = vmatpush3.bf16.msra.mxu1 %v1414_v37 }
  0xce   : > { %1416 = vmatprep.subr.bf16.mxu1 %v1565_v61 }
  0xcf   : > { %1481 = vset.pattern.permute.xlu0 %v1570_v25 }
  0xd0   : > { %1400 = vmatpush3.bf16.msra.mxu0 %v1399_v19  ;;  %1479 = vset.pattern.permute.xlu1 %v1568_v2  ;;  %v908_v19 = vsub.s32 1, %v879_v1 }
  0xd1   : > { %1401 = vmatprep.subr.bf16.mxu0 %v1565_v61  ;;  %851 = vperm.xlu1 %1479, %v1973_v6  }
  0xd2   : > { %891 = vperm.xlu0 %1481, %v813_v11   ;;  %1418 = vmatpush3.bf16.msra.mxu1 %v1417_v40 }
  0xd3   : > { %1419 = vmatprep.subr.bf16.mxu1 %v1565_v61 }
  0xd4   : > { %1403 = vmatpush3.bf16.msra.mxu0 %v1402_v22 }
  0xd5   : > { %1404 = vmatprep.subr.bf16.mxu0 %v1565_v61  ;;  %1480 = vset.pattern.permute.xlu1 %v1569_v15 }
  0xd6   : > { %871 = vperm.xlu1 %1480, %v1973_v6   ;;  %1484 = vset.pattern.permute.xlu0 %v1569_v15  ;;  %v817_v15 = vld [vmem:[%s2063_s5] sm:$0x3] }
  0xd7   : > { %875 = vperm.xlu0 %1484, %v816_v18   ;;  %1421 = vmatpush3.bf16.msra.mxu1 %v1420_v43 }
  0xd8   : > { %1406 = vmatpush3.bf16.msra.mxu0 %v1405_v26  ;;  %1422 = vmatprep.subr.bf16.mxu1 %v1565_v61 }
  0xda   : > { %1482 = vset.pattern.permute.xlu1 %v1570_v25 }
  0xdb   : > { %1346 = vmatmul.mubr.f32.vlgmr.msra.gmra.mrb[0].mxu0 %v726_v28  ;;  %895 = vperm.xlu1 %1482, %v1977_v7   ;;  %v909_v28 = vrot.slane %v817_v15, %v908_v19 }
  0xdc   : > { %1486 = vset.pattern.permute.xlu0 %v1571_v29  ;;  %1424 = vmatpush3.bf16.msra.mxu1 %v1423_v46 }
  0xdd   : > { %947 = vperm.xlu0 %1486, %v813_v11   ;;  %1425 = vmatprep.subr.bf16.mxu1 %v1565_v61 }
  0xdf   : > { %1483 = vset.pattern.permute.xlu1 %v1568_v2 }
  0xe0   : > { %855 = vperm.xlu1 %1483, %v816_v18   ;;  %1427 = vmatpush3.bf16.msra.mxu1 %v1426_v49 }
  0xe1   : > { %959 = vperm.xlu0 %1486, %v816_v18   ;;  %1428 = vmatprep.subr.bf16.mxu1 %v1565_v61 }
  0xe4   : > { %1485 = vset.pattern.permute.xlu1 %v1570_v25  ;;  %1430 = vmatpush3.bf16.msra.mxu1 %v1429_v52 }
  0xe5   : > { %899 = vperm.xlu1 %1485, %v1973_v6  }
  0xe9   : > { %903 = vperm.xlu1 %1485, %v816_v18   ;;  %v881_v18 = vrot.slane %v817_v15, %v880_v14 }
  0xed   : > { %1487 = vset.pattern.permute.xlu1 %v1571_v29 }
  0xee   : > { %951 = vperm.xlu1 %1487, %v1977_v7  }
  0xf2   : > { %955 = vperm.xlu1 %1487, %v1973_v6  }
 0x13d   : > { %v831_v53 = vpop.permute.xlu1 %830  ;;  %v848_v57 = vpop.permute.xlu0 %847 }
 0x142   : > { %v844_v54 = vpop.permute.xlu1 %843  ;;  %v821_v2 = vpop.permute.xlu0 %820 }
 0x146   : > { %v826_v6 = vpop.permute.xlu0 %825 }
 0x147   : > { %v864_v55 = vpop.permute.xlu1 %863 }
 0x148   : > { %v882_v25 = vmul.f32 %v881_v18, %v864_v55 }
 0x14a   : > { %v836_v11 = vpop.permute.xlu0 %835 }
 0x14b   : > { %v868_v56 = vpop.permute.xlu1 %867 }
 0x14c   : > { %v883_v33 = vmul.f32 %v881_v18, %v868_v56 }
 0x150   : > { %v852_v58 = vpop.permute.xlu1 %851 }
 0x151   : > { %v892_v13 = vpop.permute.xlu0 %891 }
 0x152   : > { %v910_v42 = vmul.f32 %v909_v28, %v892_v13 }
 0x155   : > { %v872_v27 = vpop.permute.xlu1 %871 }
 0x156   : > { %v876_v21 = vpop.permute.xlu0 %875  ;;  %v884_v34 = vmul.f32 %v881_v18, %v872_v27 }
 0x157   : > { %v885_v29 = vmul.f32 %v881_v18, %v876_v21 }
 0x15a   : > { %v896_v7 = vpop.permute.xlu1 %895 }
 0x15b   : > { %v911_v41 = vmul.f32 %v909_v28, %v896_v7 }
 0x15c   : > { %v948_v27 = vpop.permute.xlu0 %947 }
 0x15f   : > { %v856_v12 = vpop.permute.xlu1 %855 }
 0x160   : > { %v960_v13 = vpop.permute.xlu0 %959 }
 0x164   : > { %v900_v16 = vpop.permute.xlu1 %899 }
 0x165   : > { %v912_v35 = vmul.f32 %v909_v28, %v900_v16 }
 0x168   : > { %v904_v24 = vpop.permute.xlu1 %903 }
 0x169   : > { %v913_v36 = vmul.f32 %v909_v28, %v904_v24  ;;  %v977_v28 = vld [vmem:[#allocation3] sm:$0x7] }
 0x1ae   : > { %v2006_v59 = vpop.f32.mrb[0].mxu0 }
 0x1af   : > { %v797_v60 = vmul.f32 %v2006_v59, %v2006_v59  ;;  %v1347_v62 = vpop.f32.mrb[1].mxu0 }
 0x1b1   : > { %v799_v63 = vsel %vm798_vm1, %v797_v60, 0.0 }
 0x1b2   : > { %v800_v0 = vrot.slane %v799_v63, 4 }
 0x1b4   : > { %v801_v3 = vadd.f32 %v800_v0, %v799_v63 }
 0x1b6   : > { %v802_v61 = vrot.slane %v801_v3, 2 }
 0x1b8   : > { %v803_v5 = vadd.f32 %v802_v61, %v801_v3 }
 0x1ba   : > { %v804_v8 = vrot.slane %v803_v5, 1 }
 0x1bc   : > { %v805_v9 = vadd.f32 %v804_v8, %v803_v5 }
 0x1be   : > { %1488 = vrsqrt.f32 %v805_v9  ;;  %vm808_vm2 = vcmp.eq.f32.partialorder %v805_v9, inf  ;;  %v811_v22 = vand.u32 2147483648, %v805_v9  ;;  %vm810_vm3 = vcmp.eq.f32.partialorder %v805_v9, 0.0 }
 0x1c8   : > { %v1489_v17 = vpop.eup %1488 }
 0x1c9   : > { %v807_v20 = vmul.f32 %v1489_v17, %v805_v9 }
 0x1cb   : > { %v809_v23 = vsel %vm808_vm2, %v805_v9, %v807_v20 }
 0x1cc   : > { %v812_v26 = vsel %vm810_vm3, %v811_v22, %v809_v23 }
 0x1cd   : > { %v838_v30 = vmul.f32 %v821_v2, %v812_v26  ;;  %v839_v31 = vmul.f32 %v826_v6, %v812_v26  ;;  %v840_v32 = vmul.f32 %v831_v53, %v812_v26  ;;  %v841_v4 = vmul.f32 %v836_v11, %v812_v26  ;;  %v952_v2 = vpop.permute.xlu1 %951 }
 0x1cf   : > { %v858_v37 = vadd.f32 %v844_v54, %v838_v30  ;;  %v859_v38 = vadd.f32 %v848_v57, %v839_v31  ;;  %v860_v39 = vadd.f32 %v852_v58, %v840_v32  ;;  %v861_v40 = vadd.f32 %v856_v12, %v841_v4  ;;  %v1270_v32 = vld [vmem:[%s2059_s1] ss:$0 sm:$0xff] }
 0x1d0   : > { %v1053_v4 = vld [vmem:[#allocation2] sm:$0x7] }
 0x1d1   : > { %v888_v43 = vadd.f32 %v884_v34, %v860_v39  ;;  %v887_v44 = vadd.f32 %v883_v33, %v859_v38  ;;  %v886_v45 = vadd.f32 %v882_v25, %v858_v37  ;;  %v889_v46 = vadd.f32 %v885_v29, %v861_v40  ;;  %v956_v1 = vpop.permute.xlu1 %955 }
 0x1d3   : > { %v915_v47 = vadd.f32 %v911_v41, %v887_v44  ;;  %v914_v48 = vadd.f32 %v910_v42, %v886_v45  ;;  %v916_v49 = vadd.f32 %v912_v35, %v888_v43  ;;  %v917_v50 = vadd.f32 %v913_v36, %v889_v46  ;;  %v1064_v35 = vld [vmem:[%s1650_s18] sm:$0x7] }
 0x1d5   : > { %v1267_v51 = vmul.f32 -1.442695, %v915_v47  ;;  %v1266_v52 = vmul.f32 -1.442695, %v914_v48  ;;  %v1268_v53 = vmul.f32 -1.442695, %v916_v49 }
 0x1d6   : > { %v1269_v55 = vmul.f32 -1.442695, %v917_v50 }
 0x1d7   : > { %1490 = vpow2.f32 %v1267_v51 }
 0x1d8   : > { %1492 = vpow2.f32 %v1266_v52 }
 0x1d9   : > { %1494 = vpow2.f32 %v1268_v53 }
 0x1da   : > { %1496 = vpow2.f32 %v1269_v55 }
 0x1e1   : > { %v1491_v54 = vpop.eup %1490 }
 0x1e2   : > { %v1493_v56 = vpop.eup %1492  ;;  %v931_v57 = vadd.f32 1.0, %v1491_v54 }
 0x1e3   : > { %v1495_v58 = vpop.eup %1494  ;;  %v930_v60 = vadd.f32 1.0, %v1493_v56 }
 0x1e4   : > { %v1497_v62 = vpop.eup %1496  ;;  %1498 = vrcp.f32 %v931_v57  ;;  %v932_v63 = vadd.f32 1.0, %v1495_v58 }
 0x1e5   : > { %1500 = vrcp.f32 %v930_v60  ;;  %v933_v0 = vadd.f32 1.0, %v1497_v62 }
 0x1e6   : > { %1502 = vrcp.f32 %v932_v63 }
 0x1e7   : > { %1504 = vrcp.f32 %v933_v0 }
 0x1ee   : > { %v1499_v3 = vpop.eup %1498 }
 0x1ef   : > { %v1501_v61 = vpop.eup %1500  ;;  %v943_v5 = vmul.f32 %v1499_v3, %v915_v47 }
 0x1f0   : > { %v1503_v6 = vpop.eup %1502  ;;  %v942_v7 = vmul.f32 %v1501_v61, %v914_v48 }
 0x1f1   : > { %v1505_v8 = vpop.eup %1504  ;;  %v963_v9 = vmul.f32 %v952_v2, %v943_v5  ;;  %v944_v10 = vmul.f32 %v1503_v6, %v916_v49 }
 0x1f2   : > { %v962_v11 = vmul.f32 %v948_v27, %v942_v7  ;;  %v945_v12 = vmul.f32 %v1505_v8, %v917_v50 }
 0x1f3   : > { %v964_v15 = vmul.f32 %v956_v1, %v944_v10 }
 0x1f4   : > { %v966_v14 = vadd.f32 %v963_v9, %v962_v11  ;;  %v965_v17 = vmul.f32 %v960_v13, %v945_v12 }
 0x1f6   : > { %v967_v16 = vadd.f32 %v966_v14, %v964_v15 }
 0x1f8   : > { %v968_v18 = vadd.f32 %v967_v16, %v965_v17 }
 0x1fa   : > { %v969_v19 = vrot.slane %v968_v18, 4 }
 0x1fc   : > { %v970_v20 = vadd.f32 %v969_v19, %v968_v18 }
 0x1fe   : > { %v971_v21 = vrot.slane %v970_v20, 2 }
 0x200   : > { %v972_v22 = vadd.f32 %v971_v21, %v970_v20 }
 0x202   : > { %v973_v23 = vrot.slane %v972_v22, 1 }
 0x204   : > { %v974_v24 = vadd.f32 %v973_v23, %v972_v22 }
 0x206   : > { %1506 = vtanh.f32 %v974_v24 }
 0x210   : > { %v1507_v25 = vpop.eup %1506 }
 0x211   : > { %v976_v26 = vmul.f32 %v1507_v25, %v2006_v59 }
 0x213   : > { %1381 = vmatmul.mubr.f32.vlgmr.msra.gmra.mrb[0].mxu1 %v976_v26 }
 0x2e6   : > { %v1044_v29 = vpop.f32.mrb[0].mxu1 }
 0x2e7   : > { %v1048_v30 = vadd.f32 %v1044_v29, %v977_v28  ;;  %v1382_v31 = vpop.f32.mrb[1].mxu1 }
 0x2e9   : > { %1049 = vst [vmem:[#allocation3] sm:$0x7] %v1048_v30 }
 0x2f0   : > { %v1054_v33 = vld [vmem:[#allocation3] sm:$0x7] }
 0x2f1   : > { %v1062_v34 = vmul.f32 %v1270_v32, %v1054_v33  ;;  %1071 = sbr.rel (!%p1067_p7) target bundleno = 768 (0x300), region = 72 }
 0x2f3   : > { %v1063_v36 = vadd.f32 %v1062_v34, %v1053_v4 }
 0x2f5   : > { %v1065_v37 = vadd.f32 %v1064_v35, %v1063_v36 }
 0x2f7   : > { %1066 = vst [vmem:[#allocation2] sm:$0x7] %v1065_v37 }
 0x2fe   : > { %v1072_v59 = vld [vmem:[#allocation2] sm:$0x7] }
 0x2ff   : > { %1073 = vst [vmem:[#allocation6] sm:$0x7] %v1072_v59 }
 0x300 PF: > { %p2023_p8 = scmp.eq.s32.totalorder %s1203_s30, 3  ;;  %s1572_s14 = smov [#allocation6]  }
 0x301   : > { %s1081_s16 = sshll.u32 %s1572_s14, 4  ;;  %s1082_s16 = int_to_ptr.vmem [resolvable:$true] %s1081_s16 }
 0x302   : > { %s1508_s18 = scalar_lea.vmem %s1082_s16, 64  ;;  %p1515_p12 = scmp.lt.s32.totalorder %s1082_s16, %s1082_s16 }
 0x303   : > { %p1509_p9 = scmp.ne.s32.totalorder %s1082_s16, %s1508_s18  ;;  %p1516_p13 = scmp.lt.s32.totalorder %s1508_s18, %s1508_s18 }
 0x305   : > { %p1510_p10 = pnand %p1509_p9, %p2023_p8  ;;  %p1517_p0 = por %p1516_p13, %p1515_p12 }
 0x307   : > { %p1511_p11 = pneg %p1510_p10 }
 0x309   : > { %p1518_p1 = pnand %p1517_p0, %p1511_p11 }
 0x30b   : > { %1521 = shalt.err (!%p1518_p1)
}
 0x30c   : > { %s1522_s30 = scalar_lea.hbm %s2066_s8, 64 }
 0x30d   : > { %p1523_p2 = scmp.ne.s32.totalorder %s2066_s8, %s1522_s30  ;;  %p1528_p5 = scmp.lt.u32.totalorder %s1522_s30, %s2066_s8 }
 0x30f   : > { %p1524_p3 = pnand %p1523_p2, %p2023_p8 }
 0x311   : > { %p1525_p4 = pneg %p1524_p3 }
 0x313   : > { %p1530_p6 = pnand %p1528_p5, %p1525_p4 }
 0x315   : > { %1533 = shalt.err (!%p1530_p6)
}
 0x316   : > { %1432 = dma.vmem_to_hbm [thread:$0]  (%p2023_p8), %s1082_s16, 64, %s2066_s8, [#allocation7]  }
 0x317   : > { %1547 = dma.done.wait (%p2023_p8), [#allocation7], 64  }
 0x318   : > { %1549 = vsyncadd (%p2023_p8), [#allocation7], 4294967232 }
 0x319 PF: > { %s19_s29 = sadd.s32 1, %s1560_s29   ;;  %s2068_s27 = smov %s1556_s28 }
 0x31a   : > { %p16_p7 = scmp.ge.s32.totalorder %s19_s29, 6   ;;  %s2069_s28 = smov %s2071_s9 }
 0x31c   :  { %18 = sbr.rel (!%p16_p7) target bundleno = 2 (0x2), region = 118 }
 0x323   :  { %1094 = vsyncpa [#allocation7], 1 }
 0x324   :  { %1096 = vsyncpa [#allocation7 + $0x1], 1 }

</bundles_post_ra>
